<compile_context>
chip_gen: v7x
topology: tpu7x:2x2x1
jax: 0.10.0
libtpu: 0.0.40
codegen_flags: <defaults>
</compile_context>

<pallas_src>
import jax
import jax.numpy as jnp
from jax.experimental import pallas as pl
from jax.experimental.pallas import tpu as pltpu

# Per-block byte budget (per buffer).  2 MiB keeps (1 in + 1 out) x
# double-buffering at <= 8 MiB scoped VMEM: safe on v5e (16 MiB default
# scoped), v6e (32 MiB) and v7x (32 MiB default / 64 MiB physical).
_TARGET_BLOCK_BYTES = 2 * 1024 * 1024
_MAX_LANES = 1024  # widest lane-dense last dim we try (multiple of 128)


def _identity_kernel(x_ref, o_ref):
    # Whole hot path of EmptyModule.forward: straight VMEM load -> store.
    o_ref[...] = x_ref[...]


def empty_module_forward(x):
    """Pallas equivalent of EmptyModule.forward(x) -> x (identity)."""
    if x.size == 0:
        # Nothing to copy; avoid building a zero-width block.
        return x

    orig_shape = x.shape
    total = x.size
    itemsize = jnp.dtype(x.dtype).itemsize

    # Lane-dense flattening: pick the widest last dim (multiple of 128) that
    # divides the element count; otherwise pad to a multiple of 8*128 and trim.
    lanes = None
    for cand in (_MAX_LANES, 512, 256, 128):
        if total % cand == 0:
            lanes = cand
            break

    if lanes is None:
        lanes = 128
        pad = (-total) % (8 * 128)
        flat1d = jnp.pad(x.reshape(-1), (0, pad))
    else:
        pad = 0
        flat1d = x.reshape(-1)

    padded_total = total + pad
    rows = padded_total // lanes
    flat = flat1d.reshape(rows, lanes)

    # Pure memory traffic: tell XLA so it can overlap surrounding HLO.
    cost = pl.CostEstimate(
        flops=0, transcendentals=0, bytes_accessed=2 * padded_total * itemsize
    )

    max_rows_per_block = max(1, _TARGET_BLOCK_BYTES // (lanes * itemsize))

    if rows <= max_rows_per_block:
        # Small tensor: gridless single full-array block resident in VMEM.
        out = pl.pallas_call(
            _identity_kernel,
            out_shape=jax.ShapeDtypeStruct((rows, lanes), flat.dtype),
            in_specs=[pl.BlockSpec(memory_space=pltpu.MemorySpace.VMEM)],
            out_specs=pl.BlockSpec(memory_space=pltpu.MemorySpace.VMEM),
            input_output_aliases={0: 0},  # reuse the input HBM buffer
            cost_estimate=cost,
        )(flat)
    else:
        # Large tensor: row-tiled, software-pipelined copy.  block_rows is a
        # multiple of 8 and lanes a multiple of 128, so partial last blocks
        # are handled by Pallas clipping/masking.
        block_rows = max(8, (max_rows_per_block // 8) * 8)
        grid = (pl.cdiv(rows, block_rows),)
        out = pl.pallas_call(
            _identity_kernel,
            out_shape=jax.ShapeDtypeStruct((rows, lanes), flat.dtype),
            grid=grid,
            in_specs=[pl.BlockSpec((block_rows, lanes), lambda i: (i, 0))],
            out_specs=pl.BlockSpec((block_rows, lanes), lambda i: (i, 0)),
            input_output_aliases={0: 0},  # reuse the input HBM buffer
            compiler_params=pltpu.CompilerParams(
                # parallel axis => Mosaic can shard tiles over v7x's 2 TCs;
                # free no-op on v5e/v6e (single TC).
                dimension_semantics=("parallel",),
            ),
            cost_estimate=cost,
        )(flat)

    if pad:
        out = out.reshape(-1)[:total]
    return out.reshape(orig_shape)


if __name__ == "__main__":
    key = jax.random.PRNGKey(0)
    # NCHW input like PyTorch: batch=2, channels=4, spatial=16x16.
    x = jax.random.normal(key, (2, 4, 16, 16), dtype=jnp.float32)

    y = empty_module_forward(x)
    jax.block_until_ready(y)

    assert y.shape == x.shape and y.dtype == x.dtype
    assert bool(jnp.all(y == x))
    print("KERNEL_OK")
</pallas_src>

<mosaic_0001>
module attributes {stable_mosaic.version = 11 : i64} {
  func.func @_identity_kernel(%arg0: memref<2x1024xf32, #tpu.memory_space<vmem>>, %arg1: memref<2x1024xf32, #tpu.memory_space<vmem>>) attributes {dimension_semantics = [], scalar_prefetch = 0 : i64, scratch_operands = 0 : i64, tpu.core_type = #tpu.core_type<tc>} {
    %c0 = arith.constant 0 : index
    %c0_0 = arith.constant 0 : index
    %0 = vector.load %arg0[%c0, %c0_0] : memref<2x1024xf32, #tpu.memory_space<vmem>>, vector<2x1024xf32>
    %c0_1 = arith.constant 0 : index
    %c0_2 = arith.constant 0 : index
    %1 = vector.load %arg1[%c0_1, %c0_2] : memref<2x1024xf32, #tpu.memory_space<vmem>>, vector<2x1024xf32>
    tpu.vector_store %arg1[%c0_1, %c0_2], %0 {strides = array<i32>} : memref<2x1024xf32, #tpu.memory_space<vmem>>, vector<2x1024xf32>,
    return
  }
}

</mosaic_0001>

<bundles_post_ra>
// kernel: tpu_custom_call.1
= control target key start
LH: loop header
LB: loop body
LE: loop exit
PB: predicated region body
PF: predicated region fallthrough
CT: control target
= control target key end

     0   :  { %6 = vsyncpa [#allocation3], 0  ;;  %s126_s0 = inlined_call_operand.hbm [shape: f32[2,1024], index: 0, kind: input, shape index: {}, may-alias: {0,1}]   ;;  %s127_s1 = inlined_call_operand.hbm [shape: f32[2,1024], index: 1, kind: output, shape index: {}, may-alias: {0,1}]  }
   0x1   :  { %7 = vsyncpa [#allocation4], 0  ;;  %s90_s6 = smov [#allocation2]   ;;  %s42_s10 = scalar_lea.hbm %s126_s0, 256 }
   0x2   :  { %s14_s7 = sshll.u32 %s90_s6, 4  ;;  %p43_p0 = scmp.ne.s32.totalorder %s126_s0, %s42_s10  ;;  %s15_s7 = int_to_ptr.vmem [resolvable:$true] %s14_s7 }
   0x3   :  { %p46_p1 = scmp.lt.u32.totalorder %s42_s10, %s126_s0 }
   0x5   :  { %p48_p2 = pnand %p46_p1, %p43_p0 }
   0x7   :  { %51 = shalt.err (!%p48_p2)
}
   0x8   :  { %s52_s15 = scalar_lea.vmem %s15_s7, 256  ;;  %p57_p4 = scmp.lt.s32.totalorder %s15_s7, %s15_s7 }
   0x9   :  { %p53_p3 = scmp.ne.s32.totalorder %s15_s7, %s52_s15  ;;  %p58_p5 = scmp.lt.s32.totalorder %s52_s15, %s52_s15 }
   0xb   :  { %p59_p6 = por %p58_p5, %p57_p4 }
   0xd   :  { %p60_p7 = pnand %p59_p6, %p53_p3 }
   0xf   :  { %63 = shalt.err (!%p60_p7)
}
  0x10   :  { %17 = dma.hbm_to_vmem [thread:$0]  %s126_s0, 256, %s15_s7, [#allocation3]  }
  0x11   :  { %86 = dma.done.wait [#allocation3], 256  }
  0x12   :  { %87 = vsyncadd [#allocation3], 4294967040  ;;  %s91_s18 = smov [#allocation5]   ;;  %v21_v0 = vld [vmem:[#allocation2] sm:$0xff]  ;;  %v22_v1 = vld [vmem:[#allocation2 + $0x8] sm:$0xff] }
  0x13   :  { %s31_s19 = sshll.u32 %s91_s18, 4  ;;  %23 = vst [vmem:[#allocation5] sm:$0xff] %v21_v0  ;;  %24 = vst [vmem:[#allocation5 + $0x8] sm:$0xff] %v22_v1  ;;  %s32_s19 = int_to_ptr.vmem [resolvable:$true] %s31_s19 }
  0x14   :  { %s64_s20 = scalar_lea.vmem %s32_s19, 256  ;;  %p69_p9 = scmp.lt.s32.totalorder %s32_s19, %s32_s19 }
  0x15   :  { %p65_p8 = scmp.ne.s32.totalorder %s32_s19, %s64_s20  ;;  %p70_p10 = scmp.lt.s32.totalorder %s64_s20, %s64_s20 }
  0x17   :  { %p71_p11 = por %p70_p10, %p69_p9 }
  0x19   :  { %p72_p12 = pnand %p71_p11, %p65_p8 }
  0x1b   :  { %75 = shalt.err (!%p72_p12)
}
  0x1c   :  { %s76_s0 = scalar_lea.hbm %s127_s1, 256 }
  0x1d   :  { %p77_p13 = scmp.ne.s32.totalorder %s127_s1, %s76_s0  ;;  %p80_p0 = scmp.lt.u32.totalorder %s76_s0, %s127_s1 }
  0x1f   :  { %p82_p1 = pnand %p80_p0, %p77_p13 }
  0x21   :  { %85 = shalt.err (!%p82_p1)
}
  0x22   :  { %34 = dma.vmem_to_hbm [thread:$0]  %s32_s19, 256, %s127_s1, [#allocation4]  }
  0x23   :  { %88 = dma.done.wait [#allocation4], 256  }
  0x24   :  { %89 = vsyncadd [#allocation4], 4294967040 }
  0x25   :  { %38 = vsyncpa [#allocation3], 1 }
  0x26   :  { %39 = vsyncpa [#allocation4], 1 }

</bundles_post_ra>
